<compile_context>
chip_gen: v7x
topology: tpu7x:2x2x1
jax: 0.10.0
libtpu: 0.0.40
codegen_flags: <defaults>
</compile_context>

<pallas_src>
import numpy as np
import jax
import jax.numpy as jnp
from jax import lax
from jax.experimental import pallas as pl
from jax.experimental.pallas import tpu as pltpu


def _act(v):
    return jnp.where(v > 0, v, 0.2 * v)          # LeakyReLU(0.2); _act(0) == 0


def _make_kernel(H, W, Cin, Cout, has_cemb):
    Wp = W + 2
    Lpad = (H + 2) * Wp            # flattened padded length
    Lc = (H - 1) * Wp + W          # compute length (covers every valid output)
    Lout = H * Wp                  # stored output length -> reshape (H, Wp)

    def conv3x3(w_ref, src):
        """3x3 conv: src is a (C, Lpad) padded slab (value or VMEM ref) whose
        zero frame is already in place; w_ref is (3, Cout, 3*C) with columns
        ordered [dw*C + ci].  Width taps are folded into K -> 3 matmuls."""
        acc = jnp.zeros((Cout, Lc), jnp.float32)
        for dh in range(3):
            base = dh * Wp
            op = jnp.concatenate(
                [src[:, base + dw:base + dw + Lc] for dw in range(3)], axis=0)
            acc = acc + jnp.dot(w_ref[dh], op,
                                preferred_element_type=jnp.float32)
        return acc

    def compute(x_ref, tb_ref, cemb_ref, mask_ref, w1_ref, w2_ref, b2_ref,
                wd_ref, wsk_ref, o_ref, h1pad_ref):
        x = x_ref[0]                              # (Cin, Lpad) bf16, zero frame
        a = _act(x)                               # padding stays exactly 0

        # conv1 (+ folded bias/t-emb) and optional conditional embedding.
        acc = conv3x3(w1_ref, a)
        acc = acc + tb_ref[0]                     # b1 + (wd@t_emb + bd | t_emb)
        if has_cemb:
            acc = acc + jnp.dot(wd_ref[...], cemb_ref[0, :, :Lc],
                                preferred_element_type=jnp.float32)
        h1 = _act(acc)

        # Rebuild conv2's zero-padded input in a persistent bf16 scratch:
        # interior = masked h1; the thin zero frame is re-zeroed every step
        # (cheap, and required because the batch axis is 'parallel').
        h1m = (h1 * mask_ref[...]).astype(jnp.bfloat16)
        zthin = jnp.zeros((Cout, Wp + 1), jnp.bfloat16)
        h1pad_ref[:, :Wp + 1] = zthin
        h1pad_ref[:, Wp + 1:Wp + 1 + Lc] = h1m
        h1pad_ref[:, Wp + 1 + Lc:] = zthin

        # conv2 (1/sqrt(2) pre-folded into w2/b2) + 1x1 skip on the raw input.
        acc2 = conv3x3(w2_ref, h1pad_ref)
        acc2 = acc2 + jnp.dot(wsk_ref[...], x[:, Wp + 1:Wp + 1 + Lc],
                              preferred_element_type=jnp.float32)
        acc2 = acc2 + b2_ref[...]

        # Lane-dense bf16 store; the 2 trailing garbage lanes are zero-filled.
        o_ref[0, :, :Lc] = acc2.astype(o_ref.dtype)
        o_ref[0, :, Lc:] = jnp.zeros((Cout, Lout - Lc), o_ref.dtype)

    if has_cemb:
        def body(x_ref, tb_ref, cemb_ref, mask_ref, w1_ref, w2_ref, b2_ref,
                 wd_ref, wsk_ref, o_ref, h1pad_ref):
            compute(x_ref, tb_ref, cemb_ref, mask_ref, w1_ref, w2_ref, b2_ref,
                    wd_ref, wsk_ref, o_ref, h1pad_ref)
    else:
        def body(x_ref, tb_ref, mask_ref, w1_ref, w2_ref, b2_ref,
                 wsk_ref, o_ref, h1pad_ref):
            compute(x_ref, tb_ref, None, mask_ref, w1_ref, w2_ref, b2_ref,
                    None, wsk_ref, o_ref, h1pad_ref)
    return body


def _vmem_limit_bytes(Cin, Cout, T, Lpad, Lout, Lc, has_cemb):
    """Rough double-buffered block footprint + in-kernel temps, with headroom."""
    bf, f4 = 2, 4
    blocks = Cin * Lpad * bf + Cout * Lout * bf + Cout * f4
    if has_cemb:
        blocks += T * Lout * bf
    blocks *= 2                                   # pipeline double-buffering
    weights = (3 * Cout * 3 * Cin + 3 * Cout * 3 * Cout + Cout * Cin) * bf \
        + Cout * f4 + Lc * f4
    if has_cemb:
        weights += Cout * T * bf
    weights *= 2
    scratch = Cout * Lpad * bf
    temps = (Cin * Lpad * bf            # activated input
             + 3 * Cin * Lc * bf        # conv1 stacked operand
             + 3 * Cout * Lc * bf       # conv2 stacked operand
             + 2 * Cout * Lc * f4       # acc / acc2
             + Cout * Lc * (f4 + bf))   # h1 / masked h1
    if has_cemb:
        temps += Cout * Lc * f4
    est = int((blocks + weights + scratch + temps) * 1.5) + (4 << 20)
    return max(16 << 20, min(est, 64 << 20))


def down_conv_block(x_nchw, t_emb, params, c_emb=None, downsample=False):
    """Pallas implementation of DownConvBlock.forward (downsample=False only).

    Returns bf16 NCHW output (kernel streams activations/output in bf16)."""
    if downsample:
        # TODO(synk): FIR downsample_2d path not implemented.
        raise NotImplementedError("downsample=True path not implemented")

    B, Cin, H, W = x_nchw.shape
    Cout = params["b1"].shape[0]
    Wp = W + 2
    Lpad = (H + 2) * Wp
    Lc = (H - 1) * Wp + W
    Lout = H * Wp
    inv_s2 = np.float32(1.0 / np.sqrt(2.0))

    # ---- host-side layout prep (cheap XLA glue; bf16 HBM streams) ----------
    xflat = jnp.pad(x_nchw.astype(jnp.bfloat16),
                    ((0, 0), (0, 0), (1, 1), (1, 1))).reshape(B, Cin, Lpad)

    # PyTorch OIHW weights -> (dh, Cout, dw*C + ci) bf16 MXU layouts, with
    # 1/sqrt(2) folded into the post-residual branch (w2, b2, wskip).
    w1s = jnp.transpose(params["w1"], (2, 0, 3, 1)).reshape(3, Cout, 3 * Cin)
    w1s = w1s.astype(jnp.bfloat16)
    w2s = (jnp.transpose(params["w2"], (2, 0, 3, 1)) * inv_s2
           ).reshape(3, Cout, 3 * Cout).astype(jnp.bfloat16)
    wsk = (params["wskip"].reshape(Cout, Cin) * inv_s2).astype(jnp.bfloat16)
    b2 = (params["b2"] * inv_s2).reshape(Cout, 1).astype(jnp.float32)

    # Garbage-column mask for the Wp-strided flat layout (hoisted off-kernel).
    mask = ((jnp.arange(Lc) % Wp) < W).astype(jnp.float32).reshape(1, Lc)

    def const(shape):
        return pl.BlockSpec(shape, lambda b, _n=len(shape): (0,) * _n)

    has_cemb = c_emb is not None
    if has_cemb:
        T = t_emb.shape[1]
        # Fold b1 + bd + the t_emb projection into one per-batch (Cout,1) bias.
        tb = (params["b1"][None, :] + params["bd"][None, :]
              + t_emb.astype(jnp.float32) @ params["wd"].T
              ).astype(jnp.float32).reshape(B, Cout, 1)
        cemb_flat = jnp.pad(c_emb.astype(jnp.bfloat16),
                            ((0, 0), (0, 0), (0, 0), (0, Wp - W))
                            ).reshape(B, T, Lout)
        wd = params["wd"].astype(jnp.bfloat16)
        inputs = (xflat, tb, cemb_flat, mask, w1s, w2s, b2, wd, wsk)
        in_specs = [
            pl.BlockSpec((1, Cin, Lpad), lambda b: (b, 0, 0)),
            pl.BlockSpec((1, Cout, 1), lambda b: (b, 0, 0)),
            pl.BlockSpec((1, T, Lout), lambda b: (b, 0, 0)),
            const((1, Lc)),
            const((3, Cout, 3 * Cin)), const((3, Cout, 3 * Cout)),
            const((Cout, 1)), const((Cout, T)), const((Cout, Cin)),
        ]
    else:
        # PyTorch broadcasting requires t_emb_dim == out_channel here.
        T = t_emb.shape[1]
        assert T == Cout, "c_emb=None path requires t_emb_dim == out_channel"
        tb = (params["b1"][None, :] + t_emb.astype(jnp.float32)
              ).reshape(B, Cout, 1)
        inputs = (xflat, tb, mask, w1s, w2s, b2, wsk)
        in_specs = [
            pl.BlockSpec((1, Cin, Lpad), lambda b: (b, 0, 0)),
            pl.BlockSpec((1, Cout, 1), lambda b: (b, 0, 0)),
            const((1, Lc)),
            const((3, Cout, 3 * Cin)), const((3, Cout, 3 * Cout)),
            const((Cout, 1)), const((Cout, Cin)),
        ]

    kernel = _make_kernel(H, W, Cin, Cout, has_cemb)

    out_flat = pl.pallas_call(
        kernel,
        out_shape=jax.ShapeDtypeStruct((B, Cout, Lout), jnp.bfloat16),
        grid_spec=pltpu.PrefetchScalarGridSpec(
            num_scalar_prefetch=0,
            grid=(B,),
            in_specs=in_specs,
            out_specs=pl.BlockSpec((1, Cout, Lout), lambda b: (b, 0, 0)),
            scratch_shapes=[pltpu.VMEM((Cout, Lpad), jnp.bfloat16)],
        ),
        compiler_params=pltpu.CompilerParams(
            dimension_semantics=("parallel",),
            vmem_limit_bytes=_vmem_limit_bytes(
                Cin, Cout, T if has_cemb else 0, Lpad, Lout, Lc, has_cemb)),
    )(*inputs)

    # (B, Cout, H*Wp) -> NCHW by dropping the 2 garbage columns per row.
    return out_flat.reshape(B, Cout, H, Wp)[:, :, :, :W]


def init_params(key, in_channel, out_channel, t_emb_dim=128):
    """Deterministic synthetic parameters, shapes per DownConvBlock.__init__."""
    ks = jax.random.split(key, 7)
    return {
        "w1": jax.random.normal(ks[0], (out_channel, in_channel, 3, 3), jnp.float32) * 0.1,
        "b1": jax.random.normal(ks[1], (out_channel,), jnp.float32) * 0.1,
        "w2": jax.random.normal(ks[2], (out_channel, out_channel, 3, 3), jnp.float32) * 0.1,
        "b2": jax.random.normal(ks[3], (out_channel,), jnp.float32) * 0.1,
        "wd": jax.random.normal(ks[4], (out_channel, t_emb_dim), jnp.float32) * 0.1,
        "bd": jax.random.normal(ks[5], (out_channel,), jnp.float32) * 0.1,
        "wskip": jax.random.normal(ks[6], (out_channel, in_channel, 1, 1), jnp.float32) * 0.1,
    }


def ref_forward(x, t_emb, params, c_emb=None):
    """Pure-JAX f32 reference reproducing the PyTorch forward (NCHW)."""
    act = lambda v: jnp.where(v > 0, v, 0.2 * v)
    dn = ("NCHW", "OIHW", "NCHW")
    out = act(x)
    out = lax.conv_general_dilated(out, params["w1"], (1, 1), ((1, 1), (1, 1)),
                                   dimension_numbers=dn)
    out = out + params["b1"][None, :, None, None]
    if c_emb is not None:
        emb = t_emb[:, :, None, None] + c_emb
        emb = jnp.transpose(emb, (0, 2, 3, 1))
        B, H, W, T = emb.shape
        emb = emb.reshape(B, H * W, T) @ params["wd"].T + params["bd"]
        emb = jnp.transpose(emb.reshape(B, H, W, -1), (0, 3, 1, 2))
    else:
        emb = t_emb[:, :, None, None]
    out = out + emb
    out = act(out)
    out = lax.conv_general_dilated(out, params["w2"], (1, 1), ((1, 1), (1, 1)),
                                   dimension_numbers=dn)
    out = out + params["b2"][None, :, None, None]
    skip = lax.conv_general_dilated(x, params["wskip"], (1, 1), ((0, 0), (0, 0)),
                                    dimension_numbers=dn)
    return (out + skip) / np.sqrt(2.0)


if __name__ == "__main__":
    key = jax.random.PRNGKey(0)
    B, Cin, Cout, H, W, T = 2, 4, 8, 16, 16, 128
    kx, kt, kc, kp, kt2 = jax.random.split(key, 5)

    x = jax.random.normal(kx, (B, Cin, H, W), jnp.float32)
    t_emb = jax.random.normal(kt, (B, T), jnp.float32)
    c_emb = jax.random.normal(kc, (B, T, H, W), jnp.float32)
    params = init_params(kp, Cin, Cout, T)

    # c_emb path
    out = jax.block_until_ready(down_conv_block(x, t_emb, params, c_emb=c_emb))
    assert out.shape == (B, Cout, H, W), out.shape
    ref = ref_forward(x, t_emb, params, c_emb=c_emb)
    err = float(jnp.max(jnp.abs(out.astype(jnp.float32) - ref)))
    # bf16 MXU operands + bf16 activation/output streams with f32 accumulation
    # -> tolerance scales with the output magnitude.
    tol = 5e-2 + 1e-2 * float(jnp.max(jnp.abs(ref)))
    assert err < tol, f"c_emb path max_err={err} tol={tol}"

    # c_emb=None path (requires t_emb_dim == out_channel)
    t_emb2 = jax.random.normal(kt2, (B, Cout), jnp.float32)
    out2 = jax.block_until_ready(down_conv_block(x, t_emb2, params, c_emb=None))
    ref2 = ref_forward(x, t_emb2, params, c_emb=None)
    err2 = float(jnp.max(jnp.abs(out2.astype(jnp.float32) - ref2)))
    tol2 = 5e-2 + 1e-2 * float(jnp.max(jnp.abs(ref2)))
    assert err2 < tol2, f"no-c_emb path max_err={err2} tol={tol2}"

    print("KERNEL_OK")
</pallas_src>

<mosaic_0001>
module attributes {stable_mosaic.version = 11 : i64} {
  func.func @body(%arg0: i32, %arg1: memref<1x4x324xbf16, #tpu.memory_space<vmem>>, %arg2: memref<1x8x1xf32, #tpu.memory_space<vmem>>, %arg3: memref<1x128x288xbf16, #tpu.memory_space<vmem>>, %arg4: memref<1x286xf32, #tpu.memory_space<vmem>>, %arg5: memref<3x8x12xbf16, #tpu.memory_space<vmem>>, %arg6: memref<3x8x24xbf16, #tpu.memory_space<vmem>>, %arg7: memref<8x1xf32, #tpu.memory_space<vmem>>, %arg8: memref<8x128xbf16, #tpu.memory_space<vmem>>, %arg9: memref<8x4xbf16, #tpu.memory_space<vmem>>, %arg10: memref<1x8x288xbf16, #tpu.memory_space<vmem>>, %arg11: memref<8x324xbf16, #tpu.memory_space<vmem>>) attributes {dimension_semantics = [#tpu.dimension_semantics<parallel>], iteration_bounds = array<i64: 2>, scalar_prefetch = 0 : i64, scratch_operands = 1 : i64, tpu.core_type = #tpu.core_type<tc>, window_params = [{transform_indices = @transform_0, window_bounds = array<i64: 1, 4, 324>}, {transform_indices = @transform_1, window_bounds = array<i64: 1, 8, 1>}, {transform_indices = @transform_2, window_bounds = array<i64: 1, 128, 288>}, {pipeline_mode = #tpu.pipeline_mode<synchronous>, transform_indices = @transform_3, window_bounds = array<i64: 1, 286>}, {pipeline_mode = #tpu.pipeline_mode<synchronous>, transform_indices = @transform_4, window_bounds = array<i64: 3, 8, 12>}, {pipeline_mode = #tpu.pipeline_mode<synchronous>, transform_indices = @transform_5, window_bounds = array<i64: 3, 8, 24>}, {pipeline_mode = #tpu.pipeline_mode<synchronous>, transform_indices = @transform_6, window_bounds = array<i64: 8, 1>}, {pipeline_mode = #tpu.pipeline_mode<synchronous>, transform_indices = @transform_7, window_bounds = array<i64: 8, 128>}, {pipeline_mode = #tpu.pipeline_mode<synchronous>, transform_indices = @transform_8, window_bounds = array<i64: 8, 4>}, {transform_indices = @transform_9, window_bounds = array<i64: 1, 8, 288>}]} {
    %c0 = arith.constant 0 : index
    %c0_0 = arith.constant 0 : index
    %c0_1 = arith.constant 0 : index
    %0 = vector.load %arg1[%c0, %c0_0, %c0_1] : memref<1x4x324xbf16, #tpu.memory_space<vmem>>, vector<1x4x324xbf16>
    %1 = vector.shape_cast %0 : vector<1x4x324xbf16> to vector<4x324xbf16>
    %cst = arith.constant 0.000000e+00 : bf16
    %2 = vector.broadcast %cst : bf16 to vector<4x324xbf16>
    %3 = arith.cmpf ogt, %1, %2 : vector<4x324xbf16>
    %cst_2 = arith.constant 2.001950e-01 : bf16
    %4 = vector.broadcast %cst_2 : bf16 to vector<4x324xbf16>
    %5 = arith.mulf %4, %1 : vector<4x324xbf16>
    %6 = arith.select %3, %1, %5 : vector<4x324xi1>, vector<4x324xbf16>
    %cst_3 = arith.constant 0.000000e+00 : f32
    %7 = vector.broadcast %cst_3 : f32 to vector<8x286xf32>
    %8 = vector.extract_strided_slice %6 {offsets = [0, 0], sizes = [4, 286], strides = [1, 1]} : vector<4x324xbf16> to vector<4x286xbf16>
    %9 = vector.extract_strided_slice %6 {offsets = [0, 1], sizes = [4, 286], strides = [1, 1]} : vector<4x324xbf16> to vector<4x286xbf16>
    %10 = vector.extract_strided_slice %6 {offsets = [0, 2], sizes = [4, 286], strides = [1, 1]} : vector<4x324xbf16> to vector<4x286xbf16>
    %11 = tpu.concatenate %8, %9, %10 in 0 : vector<4x286xbf16>, vector<4x286xbf16>, vector<4x286xbf16> -> vector<12x286xbf16>
    %c0_4 = arith.constant 0 : index
    %c0_5 = arith.constant 0 : index
    %c0_6 = arith.constant 0 : index
    %12 = vector.load %arg5[%c0_4, %c0_5, %c0_6] : memref<3x8x12xbf16, #tpu.memory_space<vmem>>, vector<1x8x12xbf16>
    %13 = vector.shape_cast %12 : vector<1x8x12xbf16> to vector<8x12xbf16>
    %cst_7 = arith.constant dense<0.000000e+00> : vector<8x286xf32>
    %14 = tpu.matmul %13, %11, %cst_7 {dimension_numbers = #tpu.dot_dimension_numbers<[1], [0], [0], [1], [0, 0, 1, 1], [], []>} : vector<8x12xbf16>, vector<12x286xbf16>, vector<8x286xf32> -> vector<8x286xf32>
    %15 = arith.addf %7, %14 : vector<8x286xf32>
    %16 = vector.extract_strided_slice %6 {offsets = [0, 18], sizes = [4, 286], strides = [1, 1]} : vector<4x324xbf16> to vector<4x286xbf16>
    %17 = vector.extract_strided_slice %6 {offsets = [0, 19], sizes = [4, 286], strides = [1, 1]} : vector<4x324xbf16> to vector<4x286xbf16>
    %18 = vector.extract_strided_slice %6 {offsets = [0, 20], sizes = [4, 286], strides = [1, 1]} : vector<4x324xbf16> to vector<4x286xbf16>
    %19 = tpu.concatenate %16, %17, %18 in 0 : vector<4x286xbf16>, vector<4x286xbf16>, vector<4x286xbf16> -> vector<12x286xbf16>
    %c1 = arith.constant 1 : index
    %c0_8 = arith.constant 0 : index
    %c0_9 = arith.constant 0 : index
    %20 = vector.load %arg5[%c1, %c0_8, %c0_9] : memref<3x8x12xbf16, #tpu.memory_space<vmem>>, vector<1x8x12xbf16>
    %21 = vector.shape_cast %20 : vector<1x8x12xbf16> to vector<8x12xbf16>
    %cst_10 = arith.constant dense<0.000000e+00> : vector<8x286xf32>
    %22 = tpu.matmul %21, %19, %cst_10 {dimension_numbers = #tpu.dot_dimension_numbers<[1], [0], [0], [1], [0, 0, 1, 1], [], []>} : vector<8x12xbf16>, vector<12x286xbf16>, vector<8x286xf32> -> vector<8x286xf32>
    %23 = arith.addf %15, %22 : vector<8x286xf32>
    %24 = vector.extract_strided_slice %6 {offsets = [0, 36], sizes = [4, 286], strides = [1, 1]} : vector<4x324xbf16> to vector<4x286xbf16>
    %25 = vector.extract_strided_slice %6 {offsets = [0, 37], sizes = [4, 286], strides = [1, 1]} : vector<4x324xbf16> to vector<4x286xbf16>
    %26 = vector.extract_strided_slice %6 {offsets = [0, 38], sizes = [4, 286], strides = [1, 1]} : vector<4x324xbf16> to vector<4x286xbf16>
    %27 = tpu.concatenate %24, %25, %26 in 0 : vector<4x286xbf16>, vector<4x286xbf16>, vector<4x286xbf16> -> vector<12x286xbf16>
    %c2 = arith.constant 2 : index
    %c0_11 = arith.constant 0 : index
    %c0_12 = arith.constant 0 : index
    %28 = vector.load %arg5[%c2, %c0_11, %c0_12] : memref<3x8x12xbf16, #tpu.memory_space<vmem>>, vector<1x8x12xbf16>
    %29 = vector.shape_cast %28 : vector<1x8x12xbf16> to vector<8x12xbf16>
    %cst_13 = arith.constant dense<0.000000e+00> : vector<8x286xf32>
    %30 = tpu.matmul %29, %27, %cst_13 {dimension_numbers = #tpu.dot_dimension_numbers<[1], [0], [0], [1], [0, 0, 1, 1], [], []>} : vector<8x12xbf16>, vector<12x286xbf16>, vector<8x286xf32> -> vector<8x286xf32>
    %31 = arith.addf %23, %30 : vector<8x286xf32>
    %c0_14 = arith.constant 0 : index
    %c0_15 = arith.constant 0 : index
    %c0_16 = arith.constant 0 : index
    %32 = vector.load %arg2[%c0_14, %c0_15, %c0_16] : memref<1x8x1xf32, #tpu.memory_space<vmem>>, vector<1x8x1xf32>
    %33 = vector.shape_cast %32 : vector<1x8x1xf32> to vector<8x1xf32>
    %34 = vector.broadcast %33 : vector<8x1xf32> to vector<8x286xf32>
    %35 = arith.addf %31, %34 : vector<8x286xf32>
    %c0_17 = arith.constant 0 : index
    %c0_18 = arith.constant 0 : index
    %36 = vector.load %arg8[%c0_17, %c0_18] : memref<8x128xbf16, #tpu.memory_space<vmem>>, vector<8x128xbf16>
    %c0_19 = arith.constant 0 : index
    %c0_20 = arith.constant 0 : index
    %c0_21 = arith.constant 0 : index
    %37 = vector.load %arg3[%c0_19, %c0_20, %c0_21] : memref<1x128x288xbf16, #tpu.memory_space<vmem>>, vector<1x128x286xbf16>
    %38 = vector.shape_cast %37 : vector<1x128x286xbf16> to vector<128x286xbf16>
    %cst_22 = arith.constant dense<0.000000e+00> : vector<8x286xf32>
    %39 = tpu.matmul %36, %38, %cst_22 {dimension_numbers = #tpu.dot_dimension_numbers<[1], [0], [0], [1], [0, 0, 1, 1], [], []>} : vector<8x128xbf16>, vector<128x286xbf16>, vector<8x286xf32> -> vector<8x286xf32>
    %40 = arith.addf %35, %39 : vector<8x286xf32>
    %cst_23 = arith.constant 0.000000e+00 : f32
    %41 = vector.broadcast %cst_23 : f32 to vector<8x286xf32>
    %42 = arith.cmpf ogt, %40, %41 : vector<8x286xf32>
    %cst_24 = arith.constant 2.000000e-01 : f32
    %43 = vector.broadcast %cst_24 : f32 to vector<8x286xf32>
    %44 = arith.mulf %43, %40 : vector<8x286xf32>
    %45 = arith.select %42, %40, %44 : vector<8x286xi1>, vector<8x286xf32>
    %c0_25 = arith.constant 0 : index
    %c0_26 = arith.constant 0 : index
    %46 = vector.load %arg4[%c0_25, %c0_26] : memref<1x286xf32, #tpu.memory_space<vmem>>, vector<1x286xf32>
    %47 = vector.broadcast %46 : vector<1x286xf32> to vector<8x286xf32>
    %48 = arith.mulf %45, %47 : vector<8x286xf32>
    %49 = arith.truncf %48 : vector<8x286xf32> to vector<8x286xbf16>
    %cst_27 = arith.constant 0.000000e+00 : bf16
    %50 = vector.broadcast %cst_27 : bf16 to vector<8x19xbf16>
    %c0_28 = arith.constant 0 : index
    %c0_29 = arith.constant 0 : index
    %51 = vector.load %arg11[%c0_28, %c0_29] : memref<8x324xbf16, #tpu.memory_space<vmem>>, vector<8x19xbf16>
    tpu.vector_store %arg11[%c0_28, %c0_29], %50 {strides = array<i32>} : memref<8x324xbf16, #tpu.memory_space<vmem>>, vector<8x19xbf16>,
    %c0_30 = arith.constant 0 : index
    %c19 = arith.constant 19 : index
    %52 = vector.load %arg11[%c0_30, %c19] : memref<8x324xbf16, #tpu.memory_space<vmem>>, vector<8x286xbf16>
    tpu.vector_store %arg11[%c0_30, %c19], %49 {strides = array<i32>} : memref<8x324xbf16, #tpu.memory_space<vmem>>, vector<8x286xbf16>,
    %c0_31 = arith.constant 0 : index
    %c305 = arith.constant 305 : index
    %53 = vector.load %arg11[%c0_31, %c305] : memref<8x324xbf16, #tpu.memory_space<vmem>>, vector<8x19xbf16>
    tpu.vector_store %arg11[%c0_31, %c305], %50 {strides = array<i32>} : memref<8x324xbf16, #tpu.memory_space<vmem>>, vector<8x19xbf16>,
    %cst_32 = arith.constant 0.000000e+00 : f32
    %54 = vector.broadcast %cst_32 : f32 to vector<8x286xf32>
    %c0_33 = arith.constant 0 : index
    %c0_34 = arith.constant 0 : index
    %55 = vector.load %arg11[%c0_33, %c0_34] : memref<8x324xbf16, #tpu.memory_space<vmem>>, vector<8x286xbf16>
    %c0_35 = arith.constant 0 : index
    %c1_36 = arith.constant 1 : index
    %56 = vector.load %arg11[%c0_35, %c1_36] : memref<8x324xbf16, #tpu.memory_space<vmem>>, vector<8x286xbf16>
    %c0_37 = arith.constant 0 : index
    %c2_38 = arith.constant 2 : index
    %57 = vector.load %arg11[%c0_37, %c2_38] : memref<8x324xbf16, #tpu.memory_space<vmem>>, vector<8x286xbf16>
    %58 = tpu.concatenate %55, %56, %57 in 0 : vector<8x286xbf16>, vector<8x286xbf16>, vector<8x286xbf16> -> vector<24x286xbf16>
    %c0_39 = arith.constant 0 : index
    %c0_40 = arith.constant 0 : index
    %c0_41 = arith.constant 0 : index
    %59 = vector.load %arg6[%c0_39, %c0_40, %c0_41] : memref<3x8x24xbf16, #tpu.memory_space<vmem>>, vector<1x8x24xbf16>
    %60 = vector.shape_cast %59 : vector<1x8x24xbf16> to vector<8x24xbf16>
    %cst_42 = arith.constant dense<0.000000e+00> : vector<8x286xf32>
    %61 = tpu.matmul %60, %58, %cst_42 {dimension_numbers = #tpu.dot_dimension_numbers<[1], [0], [0], [1], [0, 0, 1, 1], [], []>} : vector<8x24xbf16>, vector<24x286xbf16>, vector<8x286xf32> -> vector<8x286xf32>
    %62 = arith.addf %54, %61 : vector<8x286xf32>
    %c0_43 = arith.constant 0 : index
    %c18 = arith.constant 18 : index
    %63 = vector.load %arg11[%c0_43, %c18] : memref<8x324xbf16, #tpu.memory_space<vmem>>, vector<8x286xbf16>
    %c0_44 = arith.constant 0 : index
    %c19_45 = arith.constant 19 : index
    %64 = vector.load %arg11[%c0_44, %c19_45] : memref<8x324xbf16, #tpu.memory_space<vmem>>, vector<8x286xbf16>
    %c0_46 = arith.constant 0 : index
    %c20 = arith.constant 20 : index
    %65 = vector.load %arg11[%c0_46, %c20] : memref<8x324xbf16, #tpu.memory_space<vmem>>, vector<8x286xbf16>
    %66 = tpu.concatenate %63, %64, %65 in 0 : vector<8x286xbf16>, vector<8x286xbf16>, vector<8x286xbf16> -> vector<24x286xbf16>
    %c1_47 = arith.constant 1 : index
    %c0_48 = arith.constant 0 : index
    %c0_49 = arith.constant 0 : index
    %67 = vector.load %arg6[%c1_47, %c0_48, %c0_49] : memref<3x8x24xbf16, #tpu.memory_space<vmem>>, vector<1x8x24xbf16>
    %68 = vector.shape_cast %67 : vector<1x8x24xbf16> to vector<8x24xbf16>
    %cst_50 = arith.constant dense<0.000000e+00> : vector<8x286xf32>
    %69 = tpu.matmul %68, %66, %cst_50 {dimension_numbers = #tpu.dot_dimension_numbers<[1], [0], [0], [1], [0, 0, 1, 1], [], []>} : vector<8x24xbf16>, vector<24x286xbf16>, vector<8x286xf32> -> vector<8x286xf32>
    %70 = arith.addf %62, %69 : vector<8x286xf32>
    %c0_51 = arith.constant 0 : index
    %c36 = arith.constant 36 : index
    %71 = vector.load %arg11[%c0_51, %c36] : memref<8x324xbf16, #tpu.memory_space<vmem>>, vector<8x286xbf16>
    %c0_52 = arith.constant 0 : index
    %c37 = arith.constant 37 : index
    %72 = vector.load %arg11[%c0_52, %c37] : memref<8x324xbf16, #tpu.memory_space<vmem>>, vector<8x286xbf16>
    %c0_53 = arith.constant 0 : index
    %c38 = arith.constant 38 : index
    %73 = vector.load %arg11[%c0_53, %c38] : memref<8x324xbf16, #tpu.memory_space<vmem>>, vector<8x286xbf16>
    %74 = tpu.concatenate %71, %72, %73 in 0 : vector<8x286xbf16>, vector<8x286xbf16>, vector<8x286xbf16> -> vector<24x286xbf16>
    %c2_54 = arith.constant 2 : index
    %c0_55 = arith.constant 0 : index
    %c0_56 = arith.constant 0 : index
    %75 = vector.load %arg6[%c2_54, %c0_55, %c0_56] : memref<3x8x24xbf16, #tpu.memory_space<vmem>>, vector<1x8x24xbf16>
    %76 = vector.shape_cast %75 : vector<1x8x24xbf16> to vector<8x24xbf16>
    %cst_57 = arith.constant dense<0.000000e+00> : vector<8x286xf32>
    %77 = tpu.matmul %76, %74, %cst_57 {dimension_numbers = #tpu.dot_dimension_numbers<[1], [0], [0], [1], [0, 0, 1, 1], [], []>} : vector<8x24xbf16>, vector<24x286xbf16>, vector<8x286xf32> -> vector<8x286xf32>
    %78 = arith.addf %70, %77 : vector<8x286xf32>
    %c0_58 = arith.constant 0 : index
    %c0_59 = arith.constant 0 : index
    %79 = vector.load %arg9[%c0_58, %c0_59] : memref<8x4xbf16, #tpu.memory_space<vmem>>, vector<8x4xbf16>
    %80 = vector.extract_strided_slice %1 {offsets = [0, 19], sizes = [4, 286], strides = [1, 1]} : vector<4x324xbf16> to vector<4x286xbf16>
    %cst_60 = arith.constant dense<0.000000e+00> : vector<8x286xf32>
    %81 = tpu.matmul %79, %80, %cst_60 {dimension_numbers = #tpu.dot_dimension_numbers<[1], [0], [0], [1], [0, 0, 1, 1], [], []>} : vector<8x4xbf16>, vector<4x286xbf16>, vector<8x286xf32> -> vector<8x286xf32>
    %82 = arith.addf %78, %81 : vector<8x286xf32>
    %c0_61 = arith.constant 0 : index
    %c0_62 = arith.constant 0 : index
    %83 = vector.load %arg7[%c0_61, %c0_62] : memref<8x1xf32, #tpu.memory_space<vmem>>, vector<8x1xf32>
    %84 = vector.broadcast %83 : vector<8x1xf32> to vector<8x286xf32>
    %85 = arith.addf %82, %84 : vector<8x286xf32>
    %86 = arith.truncf %85 : vector<8x286xf32> to vector<8x286xbf16>
    %c0_63 = arith.constant 0 : index
    %c0_64 = arith.constant 0 : index
    %c0_65 = arith.constant 0 : index
    %87 = vector.load %arg10[%c0_63, %c0_64, %c0_65] : memref<1x8x288xbf16, #tpu.memory_space<vmem>>, vector<1x8x286xbf16>
    %88 = vector.shape_cast %87 : vector<1x8x286xbf16> to vector<8x286xbf16>
    %89 = vector.shape_cast %86 : vector<8x286xbf16> to vector<1x8x286xbf16>
    tpu.vector_store %arg10[%c0_63, %c0_64, %c0_65], %89 {strides = array<i32>} : memref<1x8x288xbf16, #tpu.memory_space<vmem>>, vector<1x8x286xbf16>,
    %cst_66 = arith.constant 0.000000e+00 : bf16
    %90 = vector.broadcast %cst_66 : bf16 to vector<8x2xbf16>
    %c0_67 = arith.constant 0 : index
    %c0_68 = arith.constant 0 : index
    %c286 = arith.constant 286 : index
    %91 = vector.load %arg10[%c0_67, %c0_68, %c286] : memref<1x8x288xbf16, #tpu.memory_space<vmem>>, vector<1x8x2xbf16>
    %92 = vector.shape_cast %91 : vector<1x8x2xbf16> to vector<8x2xbf16>
    %93 = vector.shape_cast %90 : vector<8x2xbf16> to vector<1x8x2xbf16>
    tpu.vector_store %arg10[%c0_67, %c0_68, %c286], %93 {strides = array<i32>} : memref<1x8x288xbf16, #tpu.memory_space<vmem>>, vector<1x8x2xbf16>,
    return
  }
  func.func @transform_0(%arg0: i32) -> (i32, i32, i32) {
    %c0_i32 = arith.constant 0 : i32
    %c0_i32_0 = arith.constant 0 : i32
    %c0_i32_1 = arith.constant 0 : i32
    return %arg0, %c0_i32, %c0_i32_0 : i32, i32, i32
  }
  func.func @transform_1(%arg0: i32) -> (i32, i32, i32) {
    %c0_i32 = arith.constant 0 : i32
    %c0_i32_0 = arith.constant 0 : i32
    %c0_i32_1 = arith.constant 0 : i32
    return %arg0, %c0_i32, %c0_i32_0 : i32, i32, i32
  }
  func.func @transform_2(%arg0: i32) -> (i32, i32, i32) {
    %c0_i32 = arith.constant 0 : i32
    %c0_i32_0 = arith.constant 0 : i32
    %c0_i32_1 = arith.constant 0 : i32
    return %arg0, %c0_i32, %c0_i32_0 : i32, i32, i32
  }
  func.func @transform_3(%arg0: i32) -> (i32, i32) {
    %c0_i32 = arith.constant 0 : i32
    %c0_i32_0 = arith.constant 0 : i32
    %c0_i32_1 = arith.constant 0 : i32
    return %c0_i32, %c0_i32_0 : i32, i32
  }
  func.func @transform_4(%arg0: i32) -> (i32, i32, i32) {
    %c0_i32 = arith.constant 0 : i32
    %c0_i32_0 = arith.constant 0 : i32
    %c0_i32_1 = arith.constant 0 : i32
    %c0_i32_2 = arith.constant 0 : i32
    return %c0_i32, %c0_i32_0, %c0_i32_1 : i32, i32, i32
  }
  func.func @transform_5(%arg0: i32) -> (i32, i32, i32) {
    %c0_i32 = arith.constant 0 : i32
    %c0_i32_0 = arith.constant 0 : i32
    %c0_i32_1 = arith.constant 0 : i32
    %c0_i32_2 = arith.constant 0 : i32
    return %c0_i32, %c0_i32_0, %c0_i32_1 : i32, i32, i32
  }
  func.func @transform_6(%arg0: i32) -> (i32, i32) {
    %c0_i32 = arith.constant 0 : i32
    %c0_i32_0 = arith.constant 0 : i32
    %c0_i32_1 = arith.constant 0 : i32
    return %c0_i32, %c0_i32_0 : i32, i32
  }
  func.func @transform_7(%arg0: i32) -> (i32, i32) {
    %c0_i32 = arith.constant 0 : i32
    %c0_i32_0 = arith.constant 0 : i32
    %c0_i32_1 = arith.constant 0 : i32
    return %c0_i32, %c0_i32_0 : i32, i32
  }
  func.func @transform_8(%arg0: i32) -> (i32, i32) {
    %c0_i32 = arith.constant 0 : i32
    %c0_i32_0 = arith.constant 0 : i32
    %c0_i32_1 = arith.constant 0 : i32
    return %c0_i32, %c0_i32_0 : i32, i32
  }
  func.func @transform_9(%arg0: i32) -> (i32, i32, i32) {
    %c0_i32 = arith.constant 0 : i32
    %c0_i32_0 = arith.constant 0 : i32
    %c0_i32_1 = arith.constant 0 : i32
    return %arg0, %c0_i32, %c0_i32_0 : i32, i32, i32
  }
}

</mosaic_0001>

<bundles_post_ra>
// kernel: tpu_custom_call.1
= control target key start
LH: loop header
LB: loop body
LE: loop exit
PB: predicated region body
PF: predicated region fallthrough
CT: control target
= control target key end

     0   :  { %14 = vsyncpa [#allocation4], 0  ;;  %s2416_s0 = inlined_call_operand.vmem [shape: bf16[2,4,324], index: 0, kind: input, shape index: {}]   ;;  %s2417_s1 = inlined_call_operand.vmem [shape: f32[2,8,1], index: 1, kind: input, shape index: {}]   ;;  %s2418_s2 = inlined_call_operand.vmem [shape: bf16[2,128,288], index: 2, kind: input, shape index: {}]   ;;  %s2419_s3 = inlined_call_operand.vmem [shape: f32[1,286], index: 3, kind: input, shape index: {}]   ;;  %s2420_s4 = inlined_call_operand.vmem [shape: bf16[3,8,12], index: 4, kind: input, shape index: {}]   ;;  %s2421_s5 = inlined_call_operand.vmem [shape: bf16[3,8,24], index: 5, kind: input, shape index: {}]   ;;  %s2422_s6 = inlined_call_operand.vmem [shape: f32[8,1], index: 6, kind: input, shape index: {}]   ;;  %s2423_s7 = inlined_call_operand.vmem [shape: bf16[8,128], index: 7, kind: input, shape index: {}]   ;;  %s2424_s8 = inlined_call_operand.vmem [shape: bf16[8,4], index: 8, kind: input, shape index: {}]   ;;  %s2425_s9 = inlined_call_operand.hbm [shape: bf16[2,8,288], index: 9, kind: output, shape index: {}]  }
   0x1   :  { %16 = vsyncpa [#allocation4 + $0x1], 0  ;;  %s2080_s30 = smov 0   ;;  %s2082_s10 = smov 0  }
   0x2   :  { %s2084_s11 = smov 0   ;;  %s2086_s12 = smov 0  }
   0x3 LB: > { %s2101_s13 = sadd.s32 4294967295, %s2017_s12   ;;  %s1674_s14 = sadd.s32 4294967294, %s2017_s12   ;;  %s2017_s12 = sphi %s2086_s12, %s2431_s12   ;;  %s2013_s11 = sphi %s2084_s11, %s2430_s11   ;;  %s2009_s10 = sphi %s2082_s10, %s2429_s10   ;;  %s2005_s30 = sphi %s2080_s30, %s2428_s30  }
   0x4   : > { %s2105_s15 = sadd.s32 1, %s2017_s12   ;;  %s233_s16 = sadd.s32 1, %s2013_s11 }
   0x5   : > { %s230_s17 = ssub.s32 %s2017_s12, %s2105_s15  ;;  %p243_p0 = scmp.ne.s32.totalorder %s2013_s11, %s2009_s10 }
   0x6   : > { %p231_p1 = scmp.eq.s32.totalorder %s230_s17, 0  ;;  %p244_p2 = scmp.eq.s32.totalorder %s2101_s13, 1 }
   0x7   : > { %p249_p3 = scmp.ne.s32.totalorder %s2009_s10, %s2005_s30  ;;  %p250_p4 = scmp.eq.s32.totalorder %s1674_s14, 1 }
   0x8   : > { %s2116_s18 = scalar_select %p231_p1, %s2013_s11, %s233_s16  }
   0x9   : > { %p2118_p5 = por %p244_p2, %p243_p0  ;;  %p2122_p6 = por %p250_p4, %p249_p3 }
   0xa   : > { %p1677_p7 = scmp.ge.s32.totalorder %s2017_s12, 1  ;;  %p309_p8 = scmp.lt.s32.totalorder %s2017_s12, 3 }
   0xc   : > { %p310_p9 = pnand %p1677_p7, %p309_p8 }
   0xd   : > { %p354_p10 = scmp.lt.s32.totalorder (!%p310_p9), %s2101_s13, 1  ;;  %v379_v0 = vlaneseq (!%p310_p9)  ;;  %v2019_v1 = vmov (!%p310_p9), 1983009808   ;;  %s2020_s14 = smov (!%p310_p9), 127   ;;  %v2022_v20 = vmov (!%p310_p9), 0.0   ;;  %vm406_vm1 = vcmask (!%p310_p9), 1039360  }
   0xe   : > { %313 = sbr.rel (%p310_p9) target bundleno = 1198 (0x4ae), region = 56  ;;  %v377_v2 = vunpack.c.l.s4 (!%p310_p9), %v2019_v1  ;;  %s2021_s16 = smov (!%p310_p9), 126   ;;  %1770 = vmatprep.subr.bf16.mxu1 (!%p310_p9), %v2022_v20  ;;  %vm2023_vm2 = vmmov (!%p310_p9), 0   ;;  %vm420_vm3 = vcmask (!%p310_p9), 1041408   ;;  %vm417_vm4 = vcmask (!%p310_p9), 1031168  }
   0xf   : > { %v2132_v4 = vshrl.u32 (!%p310_p9), %v379_v0, 7  ;;  %1772 = vmatprep.mubr.msk.bf16.mxu1 (!%p310_p9), %vm2023_vm2, %v2022_v20  ;;  %v2024_v25 = vmov (!%p310_p9), 0   ;;  %vm430_vm5 = vcmask (!%p310_p9), 1043456   ;;  %s2025_s17 = smov (!%p310_p9), 110   ;;  %vm449_vm6 = vcmask (!%p310_p9), 900096   ;;  %s2027_s28 = smov (!%p310_p9), 19  }
  0x10   : > { %v378_v3 = vunpack.c.0.s8 (!%p310_p9), %v377_v2  ;;  %498 = vmatprep.mubr.bf16.mxu0 (!%p310_p9), %v2024_v25  ;;  %1918 = vset.pattern.permute.xlu0 (!%p310_p9), %v2024_v25  ;;  %vm456_vm7 = vcmask (!%p310_p9), 1045504   ;;  %v1681_v45 = vld [vmem:[%s2420_s4 + $0x4] sm:$0xf] (!%p310_p9)  ;;  %vm452_vm8 = vcmask (!%p310_p9), 97280   ;;  %vm645_vm9 = vcmask (!%p310_p9), 752640  }
  0x11   : > { %1919 = vset.pattern.permute.xlu1 (!%p310_p9), %v2024_v25  ;;  %v437_v51 = vld [vmem:[%s2420_s4] sm:$0xf] (!%p310_p9)  ;;  %v1688_v56 = vld [vmem:[%s2420_s4 + $0x8] sm:$0xf] (!%p310_p9)  ;;  %vm1030_vm10 = vcmask (!%p310_p9), 150528   ;;  %vm1050_vm14 = vcmask (!%p310_p9), 1043608  }
  0x12   : > { %v2147_v6 = vsub.s32 (!%p310_p9), %v378_v3, %v2132_v4  ;;  %1031 = vst.msk [vmem:[#allocation2] sm:$0xf] (!%p310_p9), %vm1030_vm10, %v2024_v25  ;;  %vm1051_vm15 = vcmask (!%p310_p9), 1047556   ;;  %vm1056_vm10 = vcmask (!%p310_p9), 552328  }
  0x15   : > { %s2130_s21 = scalar_select %p354_p10, %s2101_s13, 1 }
  0x17   : > { %s1866_s22 = smul.u32 6, %s2130_s21 }
  0x18   : > { %s1867_s23 = smul.u32 192, %s2130_s21 }
  0x19   : > { %s358_s26 = scalar_lea.vmem %s2416_s0, %s1866_s22  ;;  %s2026_s22 = smov 92  }
  0x1a   : > { %s2142_s29 = scalar_lea.vmem %s2418_s2, %s1867_s23  ;;  %v2144_v5 = vld [vmem:[%s358_s26] sm:$0x3f]  ;;  %s1679_s23 = sshll.u32 %s2130_s21, 3 }
  0x1b   : > { %vm371_vm0 = vcmp.gt.bf16.partialorder %v2144_v5, 0  ;;  %v372_v7 = vmul.bf16 1045249613, %v2144_v5  ;;  %s362_s26 = scalar_lea.vmem %s2417_s1, %s1679_s23  ;;  %v1922_v54 = vld [vmem:[%s2142_s29 + $0x4] ss:$12 sps:$4 sm:$0xff]   ;;  %s2029_s21 = smov [#allocation3]  }
  0x1c   : > { %v744_v36 = vld [vmem:[%s362_s26] sm:$0xff]  ;;  %v1923_v57 = vld [vmem:[%s2142_s29 + $0x8] ss:$12 sps:$4 sm:$0xff]   ;;  %v1928_v0 = vld [vmem:[%s2142_s29 + $0x30] ss:$12 sps:$4 sm:$0xff]  }
  0x1d   : > { %v373_v8 = vsel %vm371_vm0, %v2144_v5, %v372_v7  ;;  %v1920_v58 = vld [vmem:[%s2142_s29] ss:$12 sps:$4 sm:$0xff]   ;;  %v1926_v59 = vld [vmem:[%s2142_s29 + $0x1c] ss:$12 sps:$4 sm:$0xff]   ;;  %v1924_v61 = vld [vmem:[%s2142_s29 + $0x18] ss:$12 sps:$4 sm:$0xff]  }
  0x1e   : > { %v382_v9 = vrot.slane %v373_v8, %v2147_v6  ;;  %v391_v10 = vcombine.low %v373_v8, %v373_v8  ;;  %v375_v11 = vcombine.high %v373_v8, %v373_v8  ;;  %v1927_v60 = vld [vmem:[%s2142_s29 + $0x20] ss:$12 sps:$4 sm:$0xff]   ;;  %v1931_v63 = vld [vmem:[%s2142_s29 + $0x38] ss:$12 sps:$4 sm:$0xff]   ;;  %v1935_v2 = vld [vmem:[%s2142_s29 + $0x50] ss:$12 sps:$4 sm:$0xff]  }
  0x1f   : > { %v1930_v62 = vld [vmem:[%s2142_s29 + $0x34] ss:$12 sps:$4 sm:$0xff]   ;;  %v1934_v1 = vld [vmem:[%s2142_s29 + $0x4c] ss:$12 sps:$4 sm:$0xff]   ;;  %v1938_v7 = vld [vmem:[%s2142_s29 + $0x64] ss:$12 sps:$4 sm:$0xff]  }
  0x20   : > { %404 = vrot.lane.b32.xlu1 %v382_v9, %s2020_s14  ;;  %v398_v12 = vrot.slane %v391_v10, %v2147_v6  ;;  %v409_v13 = vcombine.low %v382_v9, %v382_v9  ;;  %v389_v14 = vrot.slane %v375_v11, %v2147_v6  ;;  %v390_v22 = vcombine.high %v382_v9, %v382_v9  ;;  %v1932_v3 = vld [vmem:[%s2142_s29 + $0x48] ss:$12 sps:$4 sm:$0xff]   ;;  %v1943_v11 = vld [vmem:[%s2142_s29 + $0x80] ss:$12 sps:$4 sm:$0xff]  }
  0x21   : > { %v1939_v8 = vld [vmem:[%s2142_s29 + $0x68] ss:$12 sps:$4 sm:$0xff]   ;;  %vm1045_vm0 = vcmask 154624  }
  0x22   : > { %400 = vrot.lane.b32.xlu0 %v398_v12, %s2020_s14  ;;  %v399_v15 = vcombine.high %v398_v12, %v398_v12  ;;  %v410_v16 = vcombine.low %v389_v14, %v389_v14  ;;  %v1942_v10 = vld [vmem:[%s2142_s29 + $0x7c] ss:$12 sps:$4 sm:$0xff]   ;;  %v1940_v12 = vld [vmem:[%s2142_s29 + $0x78] ss:$12 sps:$4 sm:$0xff]  }
  0x24   : > { %411 = vrot.lane.b32.xlu1 %v409_v13, %s2021_s16  ;;  %v1946_v13 = vld [vmem:[%s2142_s29 + $0x94] ss:$12 sps:$4 sm:$0xff]  }
  0x26   : > { %402 = vrot.lane.b32.xlu0 %v399_v15, %s2020_s14  ;;  %v1944_v15 = vld [vmem:[%s2142_s29 + $0x90] ss:$12 sps:$4 sm:$0xff]  }
  0x28   : > { %415 = vrot.lane.b32.xlu1 %v410_v16, %s2021_s16  ;;  %v1950_v16 = vld [vmem:[%s2142_s29 + $0xac] ss:$12 sps:$4 sm:$0xff]  }
  0x2a   : > { %413 = vrot.lane.b32.xlu0 %v382_v9, %s2021_s16 }
  0x92   : > { %v405_v17 = vpop.permute.xlu1 %404 }
  0x93   : > { %v429_v34 = vsel %vm420_vm3, %v389_v14, %v405_v17  ;;  %v1947_v14 = vld [vmem:[%s2142_s29 + $0x98] ss:$12 sps:$4 sm:$0xff]  }
  0x94   : > { %v401_v18 = vpop.permute.xlu0 %400 }
  0x96   : > { %v412_v19 = vpop.permute.xlu1 %411 }
  0x98   : > { %v403_v21 = vpop.permute.xlu0 %402 }
  0x99   : > { %v407_v23 = vsel %vm406_vm1, %v401_v18, %v403_v21  ;;  %v408_v24 = vsel %vm406_vm1, %v403_v21, %v405_v17  ;;  %v1951_v17 = vld [vmem:[%s2142_s29 + $0xb0] ss:$12 sps:$4 sm:$0xff]   ;;  %v1948_v18 = vld [vmem:[%s2142_s29 + $0xa8] ss:$12 sps:$4 sm:$0xff]  }
  0x9a   : > { %v416_v26 = vpop.permute.xlu1 %415  ;;  %v423_v30 = vsel %vm420_vm3, %v382_v9, %v407_v23  ;;  %v426_v31 = vsel %vm420_vm3, %v390_v22, %v408_v24  ;;  %v1936_v9 = vld [vmem:[%s2142_s29 + $0x60] ss:$12 sps:$4 sm:$0xff]   ;;  %v1011_v22 = vsub.s32 0, %v2132_v4  ;;  %s1959_s29 = sshll.u32 %s2029_s21, 4  ;;  %s1960_s29 = int_to_ptr.vmem [resolvable:$false] %s1959_s29 }
  0x9b   : > { %v436_v35 = vsel %vm430_vm5, %v429_v34, %v416_v26  ;;  %v1007_v24 = vld [vmem:[%s2419_s3] sm:$0x7]  ;;  %s1961_s27 = scalar_lea.vmem %s1960_s29, 384 }
  0x9c   : > { %v414_v27 = vpop.permute.xlu0 %413  ;;  %v554_v48 = vsel %vm456_vm7, %v436_v35, 0 }
  0x9d   : > { %v418_v28 = vsel %vm417_vm4, %v412_v19, %v414_v27  ;;  %v419_v29 = vsel %vm417_vm4, %v414_v27, %v416_v26  ;;  %v753_v19 = vld [vmem:[%s2423_s7] sm:$0xf]  ;;  %v1015_v26 = vsub.s32 1, %v2132_v4 }
  0x9e   : > { %v432_v32 = vsel %vm430_vm5, %v423_v30, %v418_v28  ;;  %v434_v33 = vsel %vm430_vm5, %v426_v31, %v419_v29 }
  0x9f   : > { %443 = vrot.lane.b32.xlu0 %v432_v32, %s2025_s17  ;;  %445 = vrot.lane.b32.xlu1 %v434_v33, %s2025_s17  ;;  %v550_v49 = vsel %vm456_vm7, %v432_v32, 0 }
  0xa3   : > { %447 = vrot.lane.b32.xlu0 %v436_v35, %s2025_s17  ;;  %639 = vrot.lane.b32.xlu1 %v432_v32, %s2026_s22 }
  0xa7   : > { %641 = vrot.lane.b32.xlu0 %v434_v33, %s2026_s22  ;;  %643 = vrot.lane.b32.xlu1 %v436_v35, %s2026_s22 }
  0xab   : > { %747 = vperm.xlu0 %1918, %v744_v36  }
 0x111   : > { %v444_v37 = vpop.permute.xlu0 %443  ;;  %v446_v38 = vpop.permute.xlu1 %445 }
 0x112   : > { %v450_v39 = vsel %vm449_vm6, %v444_v37, %v446_v38 }
 0x113   : > { %v458_v44 = vsel %vm456_vm7, %v450_v39, 0 }
 0x115   : > { %v448_v40 = vpop.permute.xlu0 %447  ;;  %v640_v41 = vpop.permute.xlu1 %639 }
 0x116   : > { %v451_v42 = vsel %vm449_vm6, %v446_v38, %v448_v40  ;;  %v464_v43 = vsel %vm456_vm7, %v448_v40, 0  ;;  %v1012_v38 = vrot.slane %v1007_v24, %v1011_v22 }
 0x117   : > { %1682 = vmatprep.subr.msk.bf16.mxu0 %vm456_vm7, %v451_v42  ;;  %1771 = vmatpush3.bf16.msra.mxu1 %v464_v43 }
 0x118   : > { %467 = vmatpush1.bf16.msra.mxu0 %v458_v44  ;;  %1776 = vmatprep.subr.bf16.mxu1 %v2022_v20 }
 0x119   : > { %v642_v46 = vpop.permute.xlu0 %641  ;;  %1685 = vmatprep.subr.msk.bf16.mxu0 %vm456_vm7, %v434_v33  ;;  %v644_v47 = vpop.permute.xlu1 %643  ;;  %v1019_v33 = vsub.s32 2, %v2132_v4 }
 0x11a   : > { %1773 = vmatmul.mubr.msk.bf16.vlgmr.msra.gmra.mrb[0].mxu1 %vm452_vm8, %v1681_v45  ;;  %v647_v50 = vsel %vm645_vm9, %v642_v46, %v644_v47  ;;  %v646_v52 = vsel %vm645_vm9, %v640_v41, %v642_v46  ;;  %v658_v53 = vsel %vm456_vm7, %v644_v47, 0  ;;  %v1016_v41 = vrot.slane %v1007_v24, %v1015_v26 }
 0x11b   : > { %1683 = vmatmul.mubr.msk.bf16.vlgmr.msra.gmra.mrb[0].mxu0 %vm452_vm8, %v1681_v45  ;;  %1777 = vmatpush3.bf16.msra.mxu1 %v554_v48  ;;  %v652_v55 = vsel %vm456_vm7, %v646_v52, 0  ;;  %v1020_v44 = vrot.slane %v1007_v24, %v1019_v33 }
 0x11c   : > { %557 = vmatpush1.bf16.msra.mxu0 %v550_v49  ;;  %1778 = vmatprep.mubr.msk.bf16.mxu1 %vm2023_vm2, %v2022_v20 }
 0x11d   : > { %1689 = vmatprep.subr.msk.bf16.mxu0 %vm456_vm7, %v647_v50  ;;  %1782 = vmatprep.subr.bf16.mxu1 %v2022_v20  ;;  %vm1052_vm7 = vmor %vm1051_vm15, %vm1050_vm14 }
 0x11e   : > { %588 = vmatprep.mubr.bf16.mxu0 %v2024_v25 }
 0x126   : > { %1779 = vmatmul.mubr.msk.bf16.vlgmr.msra.gmra.mrb[0].mxu1 %vm452_vm8, %v437_v51 }
 0x127   : > { %1783 = vmatpush3.bf16.msra.mxu1 %v658_v53  ;;  %1686 = vmatmul.mubr.msk.bf16.vlgmr.msra.gmra.mrb[0].mxu0 %vm452_vm8, %v437_v51 }
 0x128   : > { %661 = vmatpush1.bf16.msra.mxu0 %v652_v55  ;;  %1784 = vmatprep.mubr.msk.bf16.mxu1 %vm2023_vm2, %v2022_v20 }
 0x129   : > { %1788 = vmatprep.subr.bf16.mxu1 %v2022_v20  ;;  %692 = vmatprep.mubr.bf16.mxu0 %v2024_v25 }
 0x12a   : > { %914 = vmatprep.subr.bf16.mxu0 %v1922_v54  ;;  %v748_v21 = vpop.permute.xlu0 %747 }
 0x132   : > { %1785 = vmatmul.mubr.msk.bf16.vlgmr.msra.gmra.mrb[0].mxu1 %vm452_vm8, %v1688_v56 }
 0x133   : > { %1789 = vmatpush3.bf16.msra.mxu1 %v1923_v57  ;;  %1690 = vmatmul.mubr.msk.bf16.vlgmr.msra.gmra.mrb[0].mxu0 %vm452_vm8, %v1688_v56  ;;  %vm1054_vm8 = vcmask 396288  }
 0x134   : > { %915 = vmatpush1.bf16.msra.mxu0 %v1920_v58  ;;  %1790 = vmatprep.subr.bf16.mxu1 %v2022_v20 }
 0x135   : > { %916 = vmatprep.subr.bf16.mxu0 %v1926_v59  ;;  %1804 = vmatprep.mubr.msk.bf16.mxu1 %vm2023_vm2, %v2022_v20 }
 0x136   : > { %946 = vmatprep.mubr.bf16.mxu0 %v2024_v25 }
 0x137   : > { %1791 = vmatpush3.bf16.msra.mxu1 %v1927_v60 }
 0x138   : > { %917 = vmatpush1.bf16.msra.mxu0 %v1924_v61  ;;  %1792 = vmatprep.subr.bf16.mxu1 %v2022_v20 }
 0x139   : > { %918 = vmatprep.subr.bf16.mxu0 %v1930_v62 }
 0x13b   : > { %1793 = vmatpush3.bf16.msra.mxu1 %v1931_v63 }
 0x13c   : > { %919 = vmatpush1.bf16.msra.mxu0 %v1928_v0  ;;  %1794 = vmatprep.subr.bf16.mxu1 %v2022_v20 }
 0x13d   : > { %920 = vmatprep.subr.bf16.mxu0 %v1934_v1 }
 0x13f   : > { %1795 = vmatpush3.bf16.msra.mxu1 %v1935_v2 }
 0x140   : > { %921 = vmatpush1.bf16.msra.mxu0 %v1932_v3  ;;  %1796 = vmatprep.subr.bf16.mxu1 %v2022_v20 }
 0x141   : > { %922 = vmatprep.subr.bf16.mxu0 %v1938_v7 }
 0x143   : > { %1797 = vmatpush3.bf16.msra.mxu1 %v1939_v8 }
 0x144   : > { %923 = vmatpush1.bf16.msra.mxu0 %v1936_v9  ;;  %1798 = vmatprep.subr.bf16.mxu1 %v2022_v20 }
 0x145   : > { %924 = vmatprep.subr.bf16.mxu0 %v1942_v10 }
 0x147   : > { %1799 = vmatpush3.bf16.msra.mxu1 %v1943_v11 }
 0x148   : > { %925 = vmatpush1.bf16.msra.mxu0 %v1940_v12  ;;  %1800 = vmatprep.subr.bf16.mxu1 %v2022_v20  ;;  %v1434_v12 = vrot.slane %v2144_v5, %v2147_v6 }
 0x149   : > { %926 = vmatprep.subr.bf16.mxu0 %v1946_v13  ;;  %v1427_v13 = vcombine.high %v2144_v5, %v2144_v5 }
 0x14b   : > { %1801 = vmatpush3.bf16.msra.mxu1 %v1947_v14  ;;  %v1442_v14 = vcombine.high %v1434_v12, %v1434_v12 }
 0x14c   : > { %927 = vmatpush1.bf16.msra.mxu0 %v1944_v15  ;;  %1802 = vmatprep.subr.bf16.mxu1 %v2022_v20  ;;  %v1441_v15 = vrot.slane %v1427_v13, %v2147_v6 }
 0x14d   : > { %928 = vmatprep.subr.bf16.mxu0 %v1950_v16  ;;  %v1549_v16 = vld [vmem:[%s2422_s6] sm:$0xff] }
 0x14f   : > { %1803 = vmatpush3.bf16.msra.mxu1 %v1951_v17 }
 0x150   : > { %929 = vmatpush1.bf16.msra.mxu0 %v1948_v18  ;;  %1808 = vmatprep.subr.bf16.mxu1 %v2022_v20 }
 0x152   : > { %1805 = vmatmul.mubr.bf16.vlgmr.msra.gmra.mrb[0].mxu1 %v753_v19 }
 0x153   : > { %947 = vmatmul.mubr.bf16.vlgmr.msra.gmra.mrb[0].mxu0 %v753_v19  ;;  %1812 = vmatprep.mubr.msk.bf16.mxu1 %vm2023_vm2, %v2022_v20 }
 0x154   : > { %1166 = vmatprep.mubr.bf16.mxu0 %v2024_v25 }
 0x225   : > { %v989_v23 = vpop.f32.mrb[0].mxu1 }
 0x226   : > { %v1840_v27 = vadd.f32 %v989_v23, %v748_v21  ;;  %v948_v28 = vpop.f32.mrb[0].mxu0  ;;  %v1806_v29 = vpop.f32.mrb[1].mxu1 }
 0x227   : > { %v1838_v30 = vadd.f32 %v948_v28, %v748_v21  ;;  %v950_v31 = vpop.f32.mrb[1].mxu0  ;;  %v992_v32 = vpop.f32.mrb[2].mxu1 }
 0x228   : > { %v1003_v34 = vmul.f32 0.2, %v1840_v27  ;;  %v1839_v35 = vadd.f32 %v950_v31, %v748_v21  ;;  %v952_v36 = vpop.f32.mrb[2].mxu0  ;;  %v1807_v37 = vpop.f32.mrb[3].mxu1  ;;  %vm1000_vm11 = vcmp.gt.f32.partialorder %v1840_v27, 0.0 }
 0x229   : > { %vm998_vm12 = vcmp.gt.f32.partialorder %v1838_v30, 0.0  ;;  %v1001_v39 = vmul.f32 0.2, %v1838_v30  ;;  %v953_v40 = vpop.f32.mrb[3].mxu0  ;;  %v1096_v37 = vld [vmem:[%s2421_s5] sm:$0xf] }
 0x22a   : > { %vm999_vm13 = vcmp.gt.f32.partialorder %v1839_v35, 0.0  ;;  %v1002_v42 = vmul.f32 0.2, %v1839_v35  ;;  %v1006_v45 = vsel %vm1000_vm11, %v1840_v27, %v1003_v34 }
 0x22b   : > { %v1004_v43 = vsel %vm998_vm12, %v1838_v30, %v1001_v39  ;;  %v1026_v4 = vmul.f32 %v1020_v44, %v1006_v45  ;;  %v1721_v30 = vld [vmem:[%s2421_s5 + $0x4] sm:$0xf] }
 0x22c   : > { %v1005_v46 = vsel %vm999_vm13, %v1839_v35, %v1002_v42  ;;  %v1024_v47 = vmul.f32 %v1012_v38, %v1004_v43 }
 0x22d   : > { %v1025_v48 = vmul.f32 %v1016_v41, %v1005_v46  ;;  %v1741_v50 = vpack.c.bf16 %v1026_v4, %v1026_v4  ;;  %v1728_v4 = vld [vmem:[%s2421_s5 + $0x8] sm:$0xf] }
 0x22f   : > { %v1740_v49 = vpack.c.bf16 %v1025_v48, %v1024_v47 }
 0x231   : > { %1040 = vrot.lane.b32.xlu1 %v1740_v49, %s2027_s28 }
 0x235   : > { %1042 = vrot.lane.b32.xlu1 %v1741_v50, %s2027_s28  ;;  %s351_s28 = sand.u32 1, %s2009_s10  }
 0x2a3   : > { %v1041_v51 = vpop.permute.xlu1 %1040 }
 0x2a4   : > { %v1044_v52 = vrot.slane %v1041_v51, 4 }
 0x2a6   : > { %v1046_v53 = vsel %vm1045_vm0, %v1044_v52, %v1041_v51 }
 0x2a7   : > { %1053 = vst.msk [vmem:[#allocation2] sm:$0xff] %vm1052_vm7, %v1046_v53  ;;  %v1043_v54 = vpop.permute.xlu1 %1042 }
 0x2a8   : > { %v1047_v55 = vsel %vm1045_vm0, %v1044_v52, %v1043_v54  ;;  %v1425_v52 = vld [vmem:[%s2424_s8] sm:$0xf] }
 0x2a9   : > { %1055 = vst.msk [vmem:[#allocation2 + $0x8] sm:$0xf] %vm1054_vm8, %v1047_v55 }
 0x2aa   : > { %1057 = vst.msk [vmem:[#allocation2 + $0x8] sm:$0xf] %vm1056_vm10, %v2024_v25 }
 0x2ae   : > { %v1058_v56 = vld [vmem:[#allocation2] sm:$0xff] }
 0x2af   : > { %v1719_v57 = vcombine.high %v1058_v56, %v1058_v56  ;;  %v1718_v59 = vcombine.low %v1058_v56, %v1058_v56 }
 0x2b1   : > { %1070 = vrot.lane.b32.xlu0 %v1719_v57, %s2020_s14  ;;  %v1953_v58 = vld [vmem:[#allocation2 + $0x8] ss:$0 sps:$4 sm:$0xff]  }
 0x2b2   : > { %1072 = vrot.lane.b32.xlu1 %v1953_v58, %s2020_s14 }
 0x2b5   : > { %1068 = vrot.lane.b32.xlu0 %v1718_v59, %s2020_s14  ;;  %s2028_s14 = smov 109  }
 0x2b6   : > { %1076 = vrot.lane.b32.xlu1 %v1718_v59, %s2021_s16 }
 0x2b9   : > { %1078 = vrot.lane.b32.xlu0 %v1719_v57, %s2021_s16 }
 0x2ba   : > { %1080 = vrot.lane.b32.xlu1 %v1953_v58, %s2021_s16  ;;  %s1868_s16 = smul.u32 192, %s2101_s13  ;;  %s1577_s13 = scalar_lea.sflag [#allocation4], %s351_s28 }
 0x2bc   : > { %s2371_s25 = scalar_lea.hbm %s2425_s9, %s1868_s16 }
 0x323   : > { %v1071_v60 = vpop.permute.xlu0 %1070 }
 0x324   : > { %v1073_v61 = vpop.permute.xlu1 %1072 }
 0x325   : > { %v1075_v2 = vsel %vm406_vm1, %v1071_v60, %v1073_v61  ;;  %v1094_v10 = vsel %vm430_vm5, %v1953_v58, %v1073_v61 }
 0x326   : > { %v1090_v8 = vsel %vm430_vm5, %v1719_v57, %v1075_v2 }
 0x327   : > { %v1069_v62 = vpop.permute.xlu0 %1068 }
 0x328   : > { %v1074_v63 = vsel %vm406_vm1, %v1069_v62, %v1071_v60  ;;  %v1077_v1 = vpop.permute.xlu1 %1076  ;;  %vm1121_vm1 = vcmask 195584  }
 0x329   : > { %v1086_v0 = vsel %vm430_vm5, %v1718_v59, %v1074_v63 }
 0x32a   : > { %1102 = vrot.lane.b32.xlu0 %v1086_v0, %s2025_s17 }
 0x32b   : > { %v1079_v3 = vpop.permute.xlu0 %1078 }
 0x32c   : > { %v2284_v7 = vsel %vm417_vm4, %v1077_v1, %v1079_v3  ;;  %v1081_v9 = vpop.permute.xlu1 %1080 }
 0x32d   : > { %1108 = vrot.lane.b32.xlu1 %v2284_v7, %s2025_s17  ;;  %v1083_v11 = vsel %vm417_vm4, %v1079_v3, %v1081_v9  ;;  %v1225_v35 = vsel %vm430_vm5, %v1081_v9, 0  ;;  %v1219_v36 = vsel %vm430_vm5, %v2284_v7, 0  ;;  %vm1449_vm4 = vcmask 891904  }
 0x32e   : > { %1104 = vrot.lane.b32.xlu0 %v1090_v8, %s2025_s17 }
 0x331   : > { %1106 = vrot.lane.b32.xlu1 %v1094_v10, %s2025_s17 }
 0x332   : > { %1110 = vrot.lane.b32.xlu0 %v1083_v11, %s2025_s17 }
 0x335   : > { %1112 = vrot.lane.b32.xlu1 %v1081_v9, %s2025_s17 }
 0x336   : > { %1310 = vrot.lane.b32.xlu0 %v1086_v0, %s2026_s22 }
 0x339   : > { %1314 = vrot.lane.b32.xlu1 %v1094_v10, %s2026_s22 }
 0x33a   : > { %1312 = vrot.lane.b32.xlu0 %v1090_v8, %s2026_s22 }
 0x33d   : > { %1316 = vrot.lane.b32.xlu1 %v2284_v7, %s2026_s22 }
 0x33e   : > { %1318 = vrot.lane.b32.xlu0 %v1083_v11, %s2026_s22 }
 0x341   : > { %1320 = vrot.lane.b32.xlu1 %v1081_v9, %s2026_s22 }
 0x342   : > { %1443 = vrot.lane.b32.xlu0 %v1434_v12, %s2028_s14 }
 0x345   : > { %1445 = vrot.lane.b32.xlu1 %v1442_v14, %s2028_s14 }
 0x346   : > { %1447 = vrot.lane.b32.xlu0 %v1441_v15, %s2028_s14  ;;  %s1865_s14 = smul.u32 12, %s351_s28 }
 0x348   : > { %s353_s17 = scalar_lea.vmem [#allocation3], %s1865_s14 }
 0x349   : > { %1552 = vperm.xlu1 %1919, %v1549_v16   ;;  %s1591_s22 = sshll.u32 %s353_s17, 4  ;;  %s2373_s22 = int_to_ptr.vmem [resolvable:$true] %s1591_s22 }
 0x34a   : > { %s1955_s26 = scalar_lea.vmem %s2373_s22, 192  ;;  %p1962_p0 = scmp.lt.s32.totalorder %s2373_s22, %s1960_s29 }
 0x34b   : > { %p1956_p11 = scmp.ne.s32.totalorder %s2373_s22, %s1955_s26  ;;  %p1963_p1 = scmp.lt.s32.totalorder %s1961_s27, %s1955_s26 }
 0x34d   : > { %p1957_p12 = pnand %p1956_p11, %p2118_p5  ;;  %p1964_p2 = por %p1963_p1, %p1962_p0 }
 0x34f   : > { %p1958_p13 = pneg %p1957_p12 }
 0x351   : > { %p1965_p3 = pnand %p1964_p2, %p1958_p13 }
 0x39c   : > { %v1103_v17 = vpop.permute.xlu0 %1102 }
 0x39f   : > { %v1109_v18 = vpop.permute.xlu1 %1108 }
 0x3a0   : > { %v1105_v19 = vpop.permute.xlu0 %1104 }
 0x3a1   : > { %v1114_v23 = vsel %vm449_vm6, %v1103_v17, %v1105_v19 }
 0x3a3   : > { %v1107_v21 = vpop.permute.xlu1 %1106 }
 0x3a4   : > { %v1111_v22 = vpop.permute.xlu0 %1110  ;;  %1809 = vmatpush3.bf16.msra.mxu1 %v1107_v21  ;;  %v1115_v5 = vsel %vm449_vm6, %v1105_v19, %v1107_v21 }
 0x3a5   : > { %1134 = vmatprep.subr.bf16.mxu0 %v1115_v5  ;;  %1810 = vmatprep.subr.bf16.mxu1 %v2022_v20  ;;  %v1116_v6 = vsel %vm449_vm6, %v1109_v18, %v1111_v22 }
 0x3a6   : > { %1135 = vmatpush1.bf16.msra.mxu0 %v1114_v23  ;;  %v1126_v29 = vsel %vm430_vm5, %v1116_v6, 0 }
 0x3a7   : > { %v1113_v24 = vpop.permute.xlu1 %1112 }
 0x3a8   : > { %v1117_v26 = vsel %vm449_vm6, %v1111_v22, %v1113_v24  ;;  %v1132_v27 = vsel %vm430_vm5, %v1113_v24, 0  ;;  %v1311_v28 = vpop.permute.xlu0 %1310 }
 0x3a9   : > { %1722 = vmatprep.subr.msk.bf16.mxu0 %vm430_vm5, %v1117_v26  ;;  %1811 = vmatpush3.bf16.msra.mxu1 %v1132_v27 }
 0x3aa   : > { %1137 = vmatpush1.bf16.msra.mxu0 %v1126_v29  ;;  %1816 = vmatprep.subr.bf16.mxu1 %v2022_v20 }
 0x3ab   : > { %1227 = vmatprep.subr.bf16.mxu0 %v1090_v8  ;;  %v1315_v31 = vpop.permute.xlu1 %1314 }
 0x3ac   : > { %v1313_v32 = vpop.permute.xlu0 %1312  ;;  %1813 = vmatmul.mubr.msk.bf16.vlgmr.msra.gmra.mrb[4].mxu1 %vm1121_vm1, %v1721_v30 }
 0x3ad   : > { %1723 = vmatmul.mubr.msk.bf16.vlgmr.msra.gmra.mrb[4].mxu0 %vm1121_vm1, %v1721_v30  ;;  %1817 = vmatpush3.bf16.msra.mxu1 %v1094_v10  ;;  %v1323_v38 = vsel %vm645_vm9, %v1313_v32, %v1315_v31  ;;  %v1322_v41 = vsel %vm645_vm9, %v1311_v28, %v1313_v32 }
 0x3ae   : > { %1228 = vmatpush1.bf16.msra.mxu0 %v1086_v0  ;;  %1818 = vmatprep.subr.bf16.mxu1 %v2022_v20 }
 0x3af   : > { %1725 = vmatprep.subr.msk.bf16.mxu0 %vm430_vm5, %v1083_v11  ;;  %v1317_v33 = vpop.permute.xlu1 %1316  ;;  %1820 = vmatprep.mubr.msk.bf16.mxu1 %vm2023_vm2, %v2022_v20 }
 0x3b0   : > { %v1319_v34 = vpop.permute.xlu0 %1318  ;;  %1259 = vmatprep.mubr.bf16.mxu0 %v2024_v25 }
 0x3b1   : > { %1819 = vmatpush3.bf16.msra.mxu1 %v1225_v35  ;;  %v1324_v42 = vsel %vm645_vm9, %v1317_v33, %v1319_v34 }
 0x3b2   : > { %1230 = vmatpush1.bf16.msra.mxu0 %v1219_v36  ;;  %1824 = vmatprep.subr.bf16.mxu1 %v2022_v20  ;;  %v1333_v48 = vsel %vm430_vm5, %v1324_v42, 0 }
 0x3b3   : > { %1341 = vmatprep.subr.bf16.mxu0 %v1323_v38  ;;  %v1321_v39 = vpop.permute.xlu1 %1320 }
 0x3b4   : > { %1821 = vmatmul.mubr.msk.bf16.vlgmr.msra.gmra.mrb[8].mxu1 %vm1121_vm1, %v1096_v37  ;;  %v1444_v40 = vpop.permute.xlu0 %1443  ;;  %v1325_v43 = vsel %vm645_vm9, %v1319_v34, %v1321_v39  ;;  %v1339_v45 = vsel %vm430_vm5, %v1321_v39, 0 }
 0x3b5   : > { %1726 = vmatmul.mubr.msk.bf16.vlgmr.msra.gmra.mrb[8].mxu0 %vm1121_vm1, %v1096_v37  ;;  %1825 = vmatpush3.bf16.msra.mxu1 %v1315_v31 }
 0x3b6   : > { %1342 = vmatpush1.bf16.msra.mxu0 %v1322_v41  ;;  %1826 = vmatprep.subr.bf16.mxu1 %v2022_v20 }
 0x3b7   : > { %1729 = vmatprep.subr.msk.bf16.mxu0 %vm430_vm5, %v1325_v43  ;;  %v1446_v44 = vpop.permute.xlu1 %1445  ;;  %1828 = vmatprep.mubr.msk.bf16.mxu1 %vm2023_vm2, %v2022_v20  ;;  %vm1452_vm5 = vcmask 31744  }
 0x3b8   : > { %v1450_v46 = vsel %vm1449_vm4, %v1444_v40, %v1446_v44  ;;  %v1448_v47 = vpop.permute.xlu0 %1447  ;;  %1373 = vmatprep.mubr.bf16.mxu0 %v2024_v25 }
 0x3b9   : > { %1827 = vmatpush3.bf16.msra.mxu1 %v1339_v45  ;;  %v1451_v49 = vsel %vm1449_vm4, %v1446_v44, %v1448_v47  ;;  %v1463_v50 = vsel %vm420_vm3, %v1448_v47, 0  ;;  %v1457_v51 = vsel %vm420_vm3, %v1450_v46, 0 }
 0x3ba   : > { %1344 = vmatpush1.bf16.msra.mxu0 %v1333_v48  ;;  %1832 = vmatprep.subr.bf16.mxu1 %v2022_v20 }
 0x3bb   : > { %1732 = vmatprep.subr.msk.bf16.mxu0 %vm420_vm3, %v1451_v49  ;;  %vm1574_vm3 = vcmask 257264  }
 0x3bc   : > { %1829 = vmatmul.mubr.msk.bf16.vlgmr.msra.gmra.mrb[12].mxu1 %vm1121_vm1, %v1728_v4 }
 0x3bd   : > { %1730 = vmatmul.mubr.msk.bf16.vlgmr.msra.gmra.mrb[12].mxu0 %vm1121_vm1, %v1728_v4  ;;  %1833 = vmatpush3.bf16.msra.mxu1 %v1463_v50 }
 0x3be   : > { %1466 = vmatpush1.bf16.msra.mxu0 %v1457_v51  ;;  %1834 = vmatprep.mubr.msk.bf16.mxu1 %vm2023_vm2, %v2022_v20  ;;  %vm1572_vm2 = vcmask 240640  }
 0x3bf   : > { %1497 = vmatprep.mubr.bf16.mxu0 %v2024_v25 }
 0x3c4   : > { %1835 = vmatmul.mubr.msk.bf16.vlgmr.msra.gmra.mrb[16].mxu1 %vm1452_vm5, %v1425_v52 }
 0x3c5   : > { %1733 = vmatmul.mubr.msk.bf16.vlgmr.msra.gmra.mrb[16].mxu0 %vm1452_vm5, %v1425_v52 }
 0x3c8   : > { %v1553_v5 = vpop.permute.xlu1 %1552 }
 0x47f   : > { %v1209_v53 = vpop.f32.mrb[4].mxu1 }
 0x480   : > { %v1168_v54 = vpop.f32.mrb[4].mxu0  ;;  %v1814_v55 = vpop.f32.mrb[5].mxu1 }
 0x481   : > { %v1170_v56 = vpop.f32.mrb[5].mxu0  ;;  %v1212_v57 = vpop.f32.mrb[6].mxu1 }
 0x482   : > { %v1172_v58 = vpop.f32.mrb[6].mxu0  ;;  %v1815_v59 = vpop.f32.mrb[7].mxu1 }
 0x483   : > { %v1173_v60 = vpop.f32.mrb[7].mxu0 }
 0x487   : > { %v1302_v61 = vpop.f32.mrb[8].mxu1 }
 0x488   : > { %v1303_v62 = vadd.f32 %v1302_v61, %v1209_v53  ;;  %v1261_v20 = vpop.f32.mrb[8].mxu0  ;;  %v1822_v63 = vpop.f32.mrb[9].mxu1 }
 0x489   : > { %v1262_v0 = vadd.f32 %v1261_v20, %v1168_v54  ;;  %v1263_v1 = vpop.f32.mrb[9].mxu0  ;;  %v1305_v2 = vpop.f32.mrb[10].mxu1 }
 0x48a   : > { %v1264_v3 = vadd.f32 %v1263_v1, %v1170_v56  ;;  %v1265_v7 = vpop.f32.mrb[10].mxu0  ;;  %v1823_v8 = vpop.f32.mrb[11].mxu1 }
 0x48b   : > { %v1266_v9 = vpop.f32.mrb[11].mxu0 }
 0x48f   : > { %v1416_v10 = vpop.f32.mrb[12].mxu1 }
 0x490   : > { %v1424_v11 = vadd.f32 %v1416_v10, %v1303_v62  ;;  %v1375_v12 = vpop.f32.mrb[12].mxu0  ;;  %v1830_v13 = vpop.f32.mrb[13].mxu1 }
 0x491   : > { %v1422_v14 = vadd.f32 %v1375_v12, %v1262_v0  ;;  %v1377_v15 = vpop.f32.mrb[13].mxu0  ;;  %v1419_v16 = vpop.f32.mrb[14].mxu1 }
 0x492   : > { %v1423_v17 = vadd.f32 %v1377_v15, %v1264_v3  ;;  %v1379_v18 = vpop.f32.mrb[14].mxu0  ;;  %v1831_v19 = vpop.f32.mrb[15].mxu1 }
 0x493   : > { %v1380_v21 = vpop.f32.mrb[15].mxu0 }
 0x497   : > { %v1540_v22 = vpop.f32.mrb[16].mxu1 }
 0x498   : > { %v1548_v23 = vadd.f32 %v1540_v22, %v1424_v11  ;;  %v1499_v6 = vpop.f32.mrb[16].mxu0  ;;  %v1836_v24 = vpop.f32.mrb[17].mxu1 }
 0x499   : > { %v1546_v26 = vadd.f32 %v1499_v6, %v1422_v14  ;;  %v1543_v27 = vpop.f32.mrb[18].mxu1  ;;  %v1501_v28 = vpop.f32.mrb[17].mxu0 }
 0x49a   : > { %v1557_v29 = vadd.f32 %v1553_v5, %v1548_v23  ;;  %v1547_v30 = vadd.f32 %v1501_v28, %v1423_v17  ;;  %v1503_v31 = vpop.f32.mrb[18].mxu0  ;;  %v1837_v32 = vpop.f32.mrb[19].mxu1 }
 0x49b   : > { %v1555_v33 = vadd.f32 %v1553_v5, %v1546_v26  ;;  %v1504_v34 = vpop.f32.mrb[19].mxu0 }
 0x49c   : > { %v1743_v35 = vpack.c.bf16 %v1557_v29, %v1557_v29  ;;  %v1556_v36 = vadd.f32 %v1553_v5, %v1547_v30 }
 0x49e   : > { %1573 = vst.msk [vmem:[%s353_s17 + $0x8] sm:$0xf] %vm1572_vm2, %v1743_v35  ;;  %v1742_v37 = vpack.c.bf16 %v1556_v36, %v1555_v33 }
 0x49f   : > { %1575 = vst.msk [vmem:[%s353_s17 + $0x8] sm:$0xf] %vm1574_vm3, %v2024_v25 }
 0x4a0   : > { %1571 = vst [vmem:[%s353_s17] sm:$0xff] %v1742_v37 }
 0x4a1   : > { %1968 = shalt.err (!%p1965_p3)
}
 0x4a2   : > { %s1969_s28 = scalar_lea.hbm %s2371_s25, 192  ;;  %s1973_s17 = scalar_lea.hbm %s2425_s9, 384 }
 0x4a3   : > { %p1970_p4 = scmp.ne.s32.totalorder %s2371_s25, %s1969_s28  ;;  %p1974_p9 = scmp.lt.u32.totalorder %s2371_s25, %s2425_s9 }
 0x4a4   : > { %p1975_p10 = scmp.lt.u32.totalorder %s1973_s17, %s1969_s28  ;;  %p1977_p12 = scmp.lt.u32.totalorder %s1969_s28, %s2371_s25 }
 0x4a5   : > { %p1971_p7 = pnand %p1970_p4, %p2118_p5 }
 0x4a6   : > { %p1976_p11 = por %p1975_p10, %p1974_p9 }
 0x4a7   : > { %p1972_p8 = pneg %p1971_p7 }
 0x4a8   : > { %p1978_p13 = por %p1977_p12, %p1976_p11 }
 0x4aa   : > { %p1979_p0 = pnand %p1978_p13, %p1972_p8 }
 0x4ac   : > { %1982 = shalt.err (!%p1979_p0)
}
 0x4ad   : > { %1869 = dma.vmem_to_hbm [thread:$0]  (%p2118_p5), %s2373_s22, 192, %s2371_s25, %s1577_s13  }
 0x4ae PF: > { %p1875_p1 = scmp.ge.s32.totalorder %s2017_s12, 2  ;;  %s1603_s26 = sand.u32 1, %s2005_s30  }
 0x4af   : > { %s1604_s21 = scalar_lea.sflag [#allocation4], %s1603_s26 }
 0x4b0   : > { %p1872_p2 = pnand %p1875_p1, %p2122_p6 }
 0x4b2   : > { %2000 = dma.done.wait (!%p1872_p2), %s1604_s21, 192  }
 0x4b3   : > { %2002 = vsyncadd (!%p1872_p2), %s1604_s21, 4294967104  ;;  %p19_p3 = scmp.ge.s32.totalorder %s2105_s15, 4   ;;  %s2428_s30 = smov %s2009_s10 }
 0x4b4   : > { %s2429_s10 = smov %s2013_s11  ;;  %s2430_s11 = smov %s2116_s18 }
 0x4b5   : > { %s2431_s12 = smov %s2105_s15  ;;  %21 = sbr.rel (!%p19_p3) target bundleno = 3 (0x3), region = 101 }
 0x4bc   :  { %1609 = vsyncpa [#allocation4], 1 }
 0x4bd   :  { %1611 = vsyncpa [#allocation4 + $0x1], 1 }

</bundles_post_ra>
